<compile_context>
chip_gen: v6e
topology: v6e:2x2x1
jax: 0.10.0
libtpu: 0.0.40
codegen_flags: <defaults>
</compile_context>

<pallas_src>
import jax
import jax.numpy as jnp
import numpy as np
from jax.experimental import pallas as pl
from jax.experimental.pallas import tpu as pltpu


_TILE_BUDGET_BYTES = 8 * 1024 * 1024   # per-tile VMEM buffer (in and out each)
_VMEM_LIMIT_BYTES = 48 * 1024 * 1024   # 2 specs x 2 buffers x 8 MiB = 32 MiB + headroom
_MIN_STEPS = 8                         # target pipeline depth / TC-split granularity


def _copy_kernel(x_ref, o_ref):
    # Pure passthrough of the current VMEM tile (output aliases input in HBM).
    o_ref[...] = x_ref[...]


def _sublane_multiple(dtype) -> int:
    # Sublane packing: 8 rows for 4-byte, 16 for 2-byte, 32 for 1-byte dtypes.
    itemsize = jnp.dtype(dtype).itemsize
    return {4: 8, 2: 16, 1: 32}.get(itemsize, 8)


def _choose_lane_width(n: int):
    # Largest "nice" multiple of 128 that divides n (lane-dense layout).
    for c in (4096, 2048, 1024, 512, 256, 128):
        if n % c == 0:
            return c
    return None


def _pick_tiling(R: int, C: int, itemsize: int, sub: int):
    """Choose (tile_rows, grid_rows) for the pipelined row-tiled copy."""
    bytes_per_row = C * itemsize
    # Largest sublane-aligned row count whose tile stays inside the budget.
    # (max(sub, ...) can only exceed the budget if C*itemsize*sub > budget,
    #  impossible while the lane-width table tops out at 4096.)
    max_rows = max(sub, (_TILE_BUDGET_BYTES // bytes_per_row) // sub * sub)

    if R <= sub:
        # Tiny array: one full-extent block (exempt from the (8,128) rule).
        return R, 1

    # Aim for >= _MIN_STEPS pipeline steps so the input and output DMAs
    # overlap and a dual-TensorCore chip (v7x) has blocks to shard, while
    # keeping tiles sublane-aligned and inside the VMEM budget.
    tile = min(max_rows, max(sub, (pl.cdiv(R, _MIN_STEPS) // sub) * sub))
    grid = pl.cdiv(R, tile)

    # Best effort: make the step count even so v7x's two TensorCores split the
    # "parallel" row axis evenly (a no-op on single-core v5e/v6e).
    if grid > 1 and grid % 2 == 1:
        for g in (grid + 1, grid - 1):
            if g < 2:
                continue
            t = min(max_rows, max(sub, ((pl.cdiv(R, g) + sub - 1) // sub) * sub))
            if pl.cdiv(R, t) % 2 == 0:
                tile, grid = t, pl.cdiv(R, t)
                break
    return tile, grid


def _tiled_copy_2d(x2: jax.Array) -> jax.Array:
    """In-place (aliased) pipelined row-tiled copy of a 2-D lane-dense array."""
    R, C = x2.shape
    itemsize = jnp.dtype(x2.dtype).itemsize
    sub = _sublane_multiple(x2.dtype)
    tile_r, grid_r = _pick_tiling(R, C, itemsize, sub)

    return pl.pallas_call(
        _copy_kernel,
        out_shape=jax.ShapeDtypeStruct((R, C), x2.dtype),
        grid=(grid_r,),
        in_specs=[pl.BlockSpec((tile_r, C), lambda i: (i, 0))],
        out_specs=pl.BlockSpec((tile_r, C), lambda i: (i, 0)),
        # nn.Identity returns the same tensor: write the result back into the
        # input buffer (pairs with donation at the jit boundary below).
        input_output_aliases={0: 0},
        cost_estimate=pl.CostEstimate(
            flops=0, transcendentals=0, bytes_accessed=2 * R * C * itemsize),
        compiler_params=pltpu.CompilerParams(
            # Trivially parallel copy: lets v7x shard rows across both
            # TensorCores; a no-op on single-core v5e/v6e.
            dimension_semantics=("parallel",),
            vmem_limit_bytes=_VMEM_LIMIT_BYTES,
        ),
    )(x2)


def _identity(x: jax.Array) -> jax.Array:
    """Pallas implementation of nn.Identity forward."""
    orig_shape = x.shape
    n = x.size
    if n == 0:
        return x

    flat = x.reshape(-1)
    lane_c = _choose_lane_width(n)

    if lane_c is not None:
        # Lane-dense path: last dim is a large multiple of 128.
        out2 = _tiled_copy_2d(flat.reshape(n // lane_c, lane_c))
        return out2.reshape(orig_shape)

    # Element count not divisible by 128.
    m = (n // 128) * 128
    if m == 0:
        # Fewer than 128 elements: one full-extent block (both dims equal the
        # full array extents, so the (8,128) rule does not apply).
        out2 = _tiled_copy_2d(flat.reshape(1, n))
        return out2.reshape(orig_shape)

    # Copy the lane-dense prefix through the kernel and stitch the (<128
    # element) tail in the wrapper.  Replaces the old pad->copy->slice path
    # (~3x HBM traffic) with ~2x (the concatenate is the one extra pass).
    lc = _choose_lane_width(m)
    prefix = _tiled_copy_2d(flat[:m].reshape(m // lc, lc)).reshape(-1)
    return jnp.concatenate([prefix, flat[m:]]).reshape(orig_shape)


# Donate the input so XLA can alias the kernel output onto the input buffer
# (true in-place identity); the caller must not reuse a donated argument.
identity = jax.jit(_identity, donate_argnums=(0,))


if __name__ == "__main__":
    key = jax.random.PRNGKey(0)

    # Small NCHW-like input consistent with a generic forward(x).
    x = jax.random.normal(key, (2, 4, 16, 16), dtype=jnp.float32)
    x_expected = np.asarray(jax.device_get(x))  # host copy (x is donated)

    y = identity(x)
    y = jax.block_until_ready(y)

    assert y.shape == x_expected.shape, (y.shape, x_expected.shape)
    assert y.dtype == x_expected.dtype, (y.dtype, x_expected.dtype)
    assert np.array_equal(np.asarray(jax.device_get(y)), x_expected), \
        "Identity kernel output does not match input"

    # Also exercise the non-128-divisible fallback (prefix kernel + tiny tail).
    x2 = jax.random.normal(jax.random.PRNGKey(1), (5, 77), dtype=jnp.float32)
    x2_expected = np.asarray(jax.device_get(x2))
    y2 = jax.block_until_ready(identity(x2))
    assert y2.shape == x2_expected.shape and y2.dtype == x2_expected.dtype
    assert np.array_equal(np.asarray(jax.device_get(y2)), x2_expected), \
        "Identity fallback output does not match input"

    print("KERNEL_OK")
</pallas_src>

<mosaic_0001>
module attributes {stable_mosaic.version = 11 : i64} {
  func.func @_copy_kernel(%arg0: i32, %arg1: memref<1x2048xf32, #tpu.memory_space<vmem>>, %arg2: memref<1x2048xf32, #tpu.memory_space<vmem>>) attributes {dimension_semantics = [#tpu.dimension_semantics<parallel>], iteration_bounds = array<i64: 1>, scalar_prefetch = 0 : i64, scratch_operands = 0 : i64, tpu.core_type = #tpu.core_type<tc>, window_params = [{transform_indices = @transform_0, window_bounds = array<i64: 1, 2048>}, {transform_indices = @transform_1, window_bounds = array<i64: 1, 2048>}]} {
    %c0 = arith.constant 0 : index
    %c0_0 = arith.constant 0 : index
    %0 = vector.load %arg1[%c0, %c0_0] : memref<1x2048xf32, #tpu.memory_space<vmem>>, vector<1x2048xf32>
    %c0_1 = arith.constant 0 : index
    %c0_2 = arith.constant 0 : index
    %1 = vector.load %arg2[%c0_1, %c0_2] : memref<1x2048xf32, #tpu.memory_space<vmem>>, vector<1x2048xf32>
    tpu.vector_store %arg2[%c0_1, %c0_2], %0 {strides = array<i32>} : memref<1x2048xf32, #tpu.memory_space<vmem>>, vector<1x2048xf32>,
    return
  }
  func.func @transform_0(%arg0: i32) -> (i32, i32) {
    %c0_i32 = arith.constant 0 : i32
    %c0_i32_0 = arith.constant 0 : i32
    return %arg0, %c0_i32 : i32, i32
  }
  func.func @transform_1(%arg0: i32) -> (i32, i32) {
    %c0_i32 = arith.constant 0 : i32
    %c0_i32_0 = arith.constant 0 : i32
    return %arg0, %c0_i32 : i32, i32
  }
}

</mosaic_0001>

<bundles_post_ra>
// kernel: _identity.1
= control target key start
LH: loop header
LB: loop body
LE: loop exit
PB: predicated region body
PF: predicated region fallthrough
CT: control target
= control target key end

     0   :  { %s38_s0 = inlined_call_operand.vmem [shape: f32[1,2048], index: 0, kind: input, shape index: {}, may-alias: {0,1}]   ;;  %s39_s1 = inlined_call_operand.vmem [shape: f32[1,2048], index: 1, kind: output, shape index: {}, may-alias: {0,1}]  }
   0x1   :  { %v8_v0 = vld [vmem:[%s38_s0] sm:$0xff]  ;;  %v9_v1 = vld [vmem:[%s38_s0 + $0x8] sm:$0xff] }
   0x2   :  { %10 = vst [vmem:[%s39_s1] sm:$0xff] %v8_v0  ;;  %11 = vst [vmem:[%s39_s1 + $0x8] sm:$0xff] %v9_v1 }

</bundles_post_ra>
